<compile_context>
chip_gen: v5e
topology: v5e:2x2
jax: 0.10.0
libtpu: 0.0.40
codegen_flags: <defaults>
</compile_context>

<pallas_src>
import jax
import jax.numpy as jnp
from jax import lax
from jax.experimental import pallas as pl
from jax.experimental.pallas import tpu as pltpu


_SUBLANE = 8
# Per-buffer VMEM budget for one streamed B-tile of all P patches
# (BlockSpec double-buffering doubles this).
_TILE_VMEM_BUDGET = 4 * 1024 * 1024


def _make_kernel(num_patch, stacked, tb, tiles_per_par, batch, need_mask, inv_total):
    """Per-(core-slice, B-tile) kernel body.

    Inputs seen by the kernel:
      stacked=True  : one ref of shape (P, TB, D)
      stacked=False : P refs, each of shape (TB, D)
    plus out_ref (1,8,128) f32 (per-core partial) and acc_ref (1,1) f32 scratch.
    """

    def kernel(*args):
        in_refs = args[:-2]
        out_ref = args[-2]
        acc_ref = args[-1]

        p = pl.program_id(0)
        b = pl.program_id(1)

        @pl.when(b == 0)
        def _init():
            acc_ref[...] = jnp.zeros_like(acc_ref)

        if need_mask:
            row0 = (p * tiles_per_par + b) * tb
            rows = lax.broadcasted_iota(jnp.int32, (tb, 1), 0) + row0
            valid = rows < batch                       # (TB, 1) bool
        else:
            valid = None

        def load(i):
            if stacked:
                t = in_refs[0][i].astype(jnp.float32)  # (TB, D)
            else:
                t = in_refs[i][...].astype(jnp.float32)
            if valid is not None:
                # Zeroed rows contribute exactly 0 (dot == 0) to the cosine sum.
                t = jnp.where(valid, t, jnp.float32(0.0))
            return t

        # z_avg = mean over patches (same recomputation as the PyTorch module).
        z_sum = load(0)
        for i in range(1, num_patch):
            z_sum = z_sum + load(i)
        z_avg = z_sum * jnp.float32(1.0 / num_patch)                  # (TB, D)

        a_nrm2 = jnp.sum(z_avg * z_avg, axis=-1, keepdims=True)       # (TB, 1)
        eps2 = jnp.float32(1e-8 * 1e-8)                               # eps squared!

        row_sum = jnp.zeros((tb, 1), jnp.float32)
        for i in range(num_patch):
            t = load(i)                                               # re-read from VMEM
            dot = jnp.sum(t * z_avg, axis=-1, keepdims=True)          # (TB, 1)
            nrm2 = jnp.sum(t * t, axis=-1, keepdims=True)             # (TB, 1)
            # cos = dot / max(|z|*|z_avg|, eps)
            #     = dot * rsqrt(max(|z|^2 * |z_avg|^2, eps^2))
            row_sum = row_sum + dot * lax.rsqrt(jnp.maximum(nrm2 * a_nrm2, eps2))

        acc_ref[...] = acc_ref[...] + jnp.full((1, 1), jnp.sum(row_sum), jnp.float32)

        @pl.when(b == pl.num_programs(1) - 1)
        def _finalize():
            val = acc_ref[...] * jnp.float32(inv_total)               # (1, 1)
            out_ref[...] = jnp.broadcast_to(val.reshape(1, 1, 1), out_ref.shape)

    return kernel


def _choose_block_b(B, P, D, itemsize):
    rows = _TILE_VMEM_BUDGET // max(1, P * D * itemsize)
    if B <= max(rows, _SUBLANE):
        return B
    return max((int(rows) // _SUBLANE) * _SUBLANE, _SUBLANE)


def similarity_loss(z_list, z_avg=None, *, block_b=None, num_cores=2):
    """Pallas implementation of Similarity_Loss.forward.

    z_list : list/tuple of P arrays of shape (B, D), or a stacked (P, B, D) array.
    z_avg  : accepted for API parity; ignored (the module recomputes the mean).
    Returns (-z_sim, z_sim) as float32 scalars.
    """
    del z_avg  # recomputed inside, exactly as the PyTorch module does
    stacked = not isinstance(z_list, (list, tuple))
    if stacked:
        z = z_list
        P, B, D = z.shape
        dtype = z.dtype
    else:
        z_list = list(z_list)
        P = len(z_list)
        B, D = z_list[0].shape
        dtype = z_list[0].dtype

    itemsize = jnp.dtype(dtype).itemsize
    if block_b is None:
        tb = _choose_block_b(B, P, D, itemsize)
    else:
        tb = max(1, min(int(block_b), B))
    num_tiles = int(pl.cdiv(B, tb))

    # Megacore split over the B-tile axis: each core reduces its own slice into
    # its own output block; the wrapper sums the per-core partials.
    n_par = 1
    if num_cores and num_cores > 1 and num_tiles >= num_cores and num_tiles % num_cores == 0:
        n_par = int(num_cores)
    tiles_per_par = num_tiles // n_par

    # Ragged last tile -> mask rows in-kernel (no jnp.pad HBM round-trip).
    need_mask = (num_tiles * tb) != B

    if stacked:
        in_specs = [pl.BlockSpec((P, tb, D),
                                 lambda p, b: (0, p * tiles_per_par + b, 0))]
        operands = (z,)
    else:
        # P separate operands: avoids the jnp.stack HBM round-trip for list inputs.
        in_specs = [pl.BlockSpec((tb, D),
                                 lambda p, b: (p * tiles_per_par + b, 0))
                    for _ in range(P)]
        operands = tuple(z_list)

    kernel = _make_kernel(P, stacked, tb, tiles_per_par, B, need_mask,
                          1.0 / float(P * B))

    tile_in_bytes = P * tb * D * itemsize
    vmem_limit = int(min(max(2 * tile_in_bytes + 3 * tb * D * 4 + (2 << 20), 8 << 20),
                         32 << 20))
    cost = pl.CostEstimate(
        flops=8 * P * B * D,
        transcendentals=P * B,
        bytes_accessed=P * B * D * itemsize + n_par * 8 * 128 * 4,
    )

    partials = pl.pallas_call(
        kernel,
        out_shape=jax.ShapeDtypeStruct((n_par, 8, 128), jnp.float32),
        grid_spec=pltpu.PrefetchScalarGridSpec(
            num_scalar_prefetch=0,
            grid=(n_par, tiles_per_par),
            in_specs=in_specs,
            out_specs=pl.BlockSpec((1, 8, 128), lambda p, b: (p, 0, 0)),
            scratch_shapes=[pltpu.VMEM((1, 1), jnp.float32)],
        ),
        compiler_params=pltpu.CompilerParams(
            dimension_semantics=("parallel", "arbitrary"),
            vmem_limit_bytes=vmem_limit,
        ),
        cost_estimate=cost,
    )(*operands)

    z_sim = jnp.sum(partials[:, 0, 0])
    # TODO(synk): .clone().detach() has no JAX analogue; the same value is returned.
    return -z_sim, z_sim


def _reference(z_list):
    z = jnp.stack(list(z_list), axis=0).astype(jnp.float32)
    z_avg = jnp.mean(z, axis=0)
    dot = jnp.sum(z * z_avg[None], axis=-1)
    denom = jnp.maximum(
        jnp.linalg.norm(z, axis=-1) * jnp.linalg.norm(z_avg, axis=-1)[None], 1e-8
    )
    z_sim = jnp.mean(dot / denom)
    return -z_sim, z_sim


if __name__ == "__main__":
    # Tolerances slightly looser than f32 ulp because the kernel uses the EUP
    # rsqrt fusion instead of sqrt+sqrt+divide; differences are ~1e-5 on a O(1) loss.
    ATOL, RTOL = 2e-4, 1e-3

    key = jax.random.PRNGKey(0)

    # 1) Small shapes matching the module: P patches of (B, D), list input, single tile.
    P, B, D = 4, 8, 32
    keys = jax.random.split(key, P)
    z_list = [jax.random.normal(k, (B, D), dtype=jnp.float32) for k in keys]
    z_avg_dummy = jnp.zeros((B, D), dtype=jnp.float32)  # ignored, as in PyTorch module

    neg, pos = similarity_loss(z_list, z_avg_dummy)
    jax.block_until_ready((neg, pos))
    r_neg, r_pos = _reference(z_list)
    assert jnp.allclose(neg, r_neg, atol=ATOL, rtol=RTOL), (neg, r_neg)
    assert jnp.allclose(pos, r_pos, atol=ATOL, rtol=RTOL), (pos, r_pos)
    assert jnp.allclose(neg, -pos)

    # 2) Stacked (P,B,D) input, multi-tile grid with the megacore split (grid (2,2)).
    P2, B2, D2 = 4, 32, 32
    z2 = jax.random.normal(jax.random.PRNGKey(1), (P2, B2, D2), dtype=jnp.float32)
    neg2, pos2 = similarity_loss(z2, None, block_b=8)
    jax.block_until_ready((neg2, pos2))
    r_neg2, r_pos2 = _reference(list(z2))
    assert jnp.allclose(neg2, r_neg2, atol=ATOL, rtol=RTOL), (neg2, r_neg2)
    assert jnp.allclose(pos2, r_pos2, atol=ATOL, rtol=RTOL), (pos2, r_pos2)

    # 3) Ragged B exercising the in-kernel masked last tile (no padding copy).
    P3, B3, D3 = 3, 20, 32
    z3_list = [
        jax.random.normal(k, (B3, D3), dtype=jnp.float32)
        for k in jax.random.split(jax.random.PRNGKey(2), P3)
    ]
    neg3, pos3 = similarity_loss(z3_list, None, block_b=8)  # tiles cover 24 > 20 rows
    jax.block_until_ready((neg3, pos3))
    r_neg3, r_pos3 = _reference(z3_list)
    assert jnp.allclose(neg3, r_neg3, atol=ATOL, rtol=RTOL), (neg3, r_neg3)
    assert jnp.allclose(pos3, r_pos3, atol=ATOL, rtol=RTOL), (pos3, r_pos3)

    # 4) bf16 list input, megacore split with one tile per core slice.
    P4, B4, D4 = 4, 16, 64
    z4_list = [
        jax.random.normal(k, (B4, D4), dtype=jnp.float32).astype(jnp.bfloat16)
        for k in jax.random.split(jax.random.PRNGKey(3), P4)
    ]
    neg4, pos4 = similarity_loss(z4_list, None, block_b=8)
    jax.block_until_ready((neg4, pos4))
    r_neg4, r_pos4 = _reference(z4_list)
    assert jnp.allclose(neg4, r_neg4, atol=ATOL, rtol=RTOL), (neg4, r_neg4)
    assert jnp.allclose(pos4, r_pos4, atol=ATOL, rtol=RTOL), (pos4, r_pos4)

    print("KERNEL_OK")
</pallas_src>

<mosaic_0001>
module attributes {stable_mosaic.version = 11 : i64} {
  func.func @kernel(%arg0: i32, %arg1: i32, %arg2: memref<8x32xf32, #tpu.memory_space<vmem>>, %arg3: memref<8x32xf32, #tpu.memory_space<vmem>>, %arg4: memref<8x32xf32, #tpu.memory_space<vmem>>, %arg5: memref<8x32xf32, #tpu.memory_space<vmem>>, %arg6: memref<1x8x128xf32, #tpu.memory_space<vmem>>, %arg7: memref<1x1xf32, #tpu.memory_space<vmem>>) attributes {dimension_semantics = [#tpu.dimension_semantics<parallel>, #tpu.dimension_semantics<arbitrary>], iteration_bounds = array<i64: 1, 1>, scalar_prefetch = 0 : i64, scratch_operands = 1 : i64, tpu.core_type = #tpu.core_type<tc>, window_params = [{transform_indices = @transform_0, window_bounds = array<i64: 8, 32>}, {transform_indices = @transform_1, window_bounds = array<i64: 8, 32>}, {transform_indices = @transform_2, window_bounds = array<i64: 8, 32>}, {transform_indices = @transform_3, window_bounds = array<i64: 8, 32>}, {transform_indices = @transform_4, window_bounds = array<i64: 1, 8, 128>}]} {
    %c0_i32 = arith.constant 0 : i32
    %0 = arith.cmpi eq, %arg1, %c0_i32 : i32
    %1 = arith.extui %0 : i1 to i32
    %c0_i32_0 = arith.constant 0 : i32
    %2 = arith.cmpi ne, %1, %c0_i32_0 : i32
    scf.if %2 {
      %cst_37 = arith.constant 0.000000e+00 : f32
      %79 = vector.broadcast %cst_37 : f32 to vector<1x1xf32>
      %c0_38 = arith.constant 0 : index
      %c0_39 = arith.constant 0 : index
      %80 = vector.load %arg7[%c0_38, %c0_39] : memref<1x1xf32, #tpu.memory_space<vmem>>, vector<1x1xf32>
      tpu.vector_store %arg7[%c0_38, %c0_39], %79 {strides = array<i32>} : memref<1x1xf32, #tpu.memory_space<vmem>>, vector<1x1xf32>,
    } else {
    }
    %c0 = arith.constant 0 : index
    %c0_1 = arith.constant 0 : index
    %3 = vector.load %arg2[%c0, %c0_1] : memref<8x32xf32, #tpu.memory_space<vmem>>, vector<8x32xf32>
    %c0_2 = arith.constant 0 : index
    %c0_3 = arith.constant 0 : index
    %4 = vector.load %arg3[%c0_2, %c0_3] : memref<8x32xf32, #tpu.memory_space<vmem>>, vector<8x32xf32>
    %5 = arith.addf %3, %4 : vector<8x32xf32>
    %c0_4 = arith.constant 0 : index
    %c0_5 = arith.constant 0 : index
    %6 = vector.load %arg4[%c0_4, %c0_5] : memref<8x32xf32, #tpu.memory_space<vmem>>, vector<8x32xf32>
    %7 = arith.addf %5, %6 : vector<8x32xf32>
    %c0_6 = arith.constant 0 : index
    %c0_7 = arith.constant 0 : index
    %8 = vector.load %arg5[%c0_6, %c0_7] : memref<8x32xf32, #tpu.memory_space<vmem>>, vector<8x32xf32>
    %9 = arith.addf %7, %8 : vector<8x32xf32>
    %cst = arith.constant 2.500000e-01 : f32
    %10 = vector.broadcast %cst : f32 to vector<8x32xf32>
    %11 = arith.mulf %9, %10 : vector<8x32xf32>
    %12 = arith.mulf %11, %11 : vector<8x32xf32>
    %cst_8 = arith.constant dense<0.000000e+00> : vector<8xf32>
    %13 = vector.multi_reduction <add>, %12, %cst_8 [1] : vector<8x32xf32> to vector<8xf32>
    %14 = vector.shape_cast %13 : vector<8xf32> to vector<8x1xf32>
    %cst_9 = arith.constant 0.000000e+00 : f32
    %15 = vector.broadcast %cst_9 : f32 to vector<8x1xf32>
    %c0_10 = arith.constant 0 : index
    %c0_11 = arith.constant 0 : index
    %16 = vector.load %arg2[%c0_10, %c0_11] : memref<8x32xf32, #tpu.memory_space<vmem>>, vector<8x32xf32>
    %17 = arith.mulf %16, %11 : vector<8x32xf32>
    %cst_12 = arith.constant dense<0.000000e+00> : vector<8xf32>
    %18 = vector.multi_reduction <add>, %17, %cst_12 [1] : vector<8x32xf32> to vector<8xf32>
    %19 = vector.shape_cast %18 : vector<8xf32> to vector<8x1xf32>
    %20 = arith.mulf %16, %16 : vector<8x32xf32>
    %cst_13 = arith.constant dense<0.000000e+00> : vector<8xf32>
    %21 = vector.multi_reduction <add>, %20, %cst_13 [1] : vector<8x32xf32> to vector<8xf32>
    %22 = vector.shape_cast %21 : vector<8xf32> to vector<8x1xf32>
    %23 = arith.mulf %22, %14 : vector<8x1xf32>
    %cst_14 = arith.constant 1.000000e-16 : f32
    %24 = vector.broadcast %cst_14 : f32 to vector<8x1xf32>
    %25 = arith.maximumf %23, %24 : vector<8x1xf32>
    %26 = math.rsqrt %25 : vector<8x1xf32>
    %27 = arith.mulf %19, %26 : vector<8x1xf32>
    %28 = arith.addf %15, %27 : vector<8x1xf32>
    %c0_15 = arith.constant 0 : index
    %c0_16 = arith.constant 0 : index
    %29 = vector.load %arg3[%c0_15, %c0_16] : memref<8x32xf32, #tpu.memory_space<vmem>>, vector<8x32xf32>
    %30 = arith.mulf %29, %11 : vector<8x32xf32>
    %cst_17 = arith.constant dense<0.000000e+00> : vector<8xf32>
    %31 = vector.multi_reduction <add>, %30, %cst_17 [1] : vector<8x32xf32> to vector<8xf32>
    %32 = vector.shape_cast %31 : vector<8xf32> to vector<8x1xf32>
    %33 = arith.mulf %29, %29 : vector<8x32xf32>
    %cst_18 = arith.constant dense<0.000000e+00> : vector<8xf32>
    %34 = vector.multi_reduction <add>, %33, %cst_18 [1] : vector<8x32xf32> to vector<8xf32>
    %35 = vector.shape_cast %34 : vector<8xf32> to vector<8x1xf32>
    %36 = arith.mulf %35, %14 : vector<8x1xf32>
    %cst_19 = arith.constant 1.000000e-16 : f32
    %37 = vector.broadcast %cst_19 : f32 to vector<8x1xf32>
    %38 = arith.maximumf %36, %37 : vector<8x1xf32>
    %39 = math.rsqrt %38 : vector<8x1xf32>
    %40 = arith.mulf %32, %39 : vector<8x1xf32>
    %41 = arith.addf %28, %40 : vector<8x1xf32>
    %c0_20 = arith.constant 0 : index
    %c0_21 = arith.constant 0 : index
    %42 = vector.load %arg4[%c0_20, %c0_21] : memref<8x32xf32, #tpu.memory_space<vmem>>, vector<8x32xf32>
    %43 = arith.mulf %42, %11 : vector<8x32xf32>
    %cst_22 = arith.constant dense<0.000000e+00> : vector<8xf32>
    %44 = vector.multi_reduction <add>, %43, %cst_22 [1] : vector<8x32xf32> to vector<8xf32>
    %45 = vector.shape_cast %44 : vector<8xf32> to vector<8x1xf32>
    %46 = arith.mulf %42, %42 : vector<8x32xf32>
    %cst_23 = arith.constant dense<0.000000e+00> : vector<8xf32>
    %47 = vector.multi_reduction <add>, %46, %cst_23 [1] : vector<8x32xf32> to vector<8xf32>
    %48 = vector.shape_cast %47 : vector<8xf32> to vector<8x1xf32>
    %49 = arith.mulf %48, %14 : vector<8x1xf32>
    %cst_24 = arith.constant 1.000000e-16 : f32
    %50 = vector.broadcast %cst_24 : f32 to vector<8x1xf32>
    %51 = arith.maximumf %49, %50 : vector<8x1xf32>
    %52 = math.rsqrt %51 : vector<8x1xf32>
    %53 = arith.mulf %45, %52 : vector<8x1xf32>
    %54 = arith.addf %41, %53 : vector<8x1xf32>
    %c0_25 = arith.constant 0 : index
    %c0_26 = arith.constant 0 : index
    %55 = vector.load %arg5[%c0_25, %c0_26] : memref<8x32xf32, #tpu.memory_space<vmem>>, vector<8x32xf32>
    %56 = arith.mulf %55, %11 : vector<8x32xf32>
    %cst_27 = arith.constant dense<0.000000e+00> : vector<8xf32>
    %57 = vector.multi_reduction <add>, %56, %cst_27 [1] : vector<8x32xf32> to vector<8xf32>
    %58 = vector.shape_cast %57 : vector<8xf32> to vector<8x1xf32>
    %59 = arith.mulf %55, %55 : vector<8x32xf32>
    %cst_28 = arith.constant dense<0.000000e+00> : vector<8xf32>
    %60 = vector.multi_reduction <add>, %59, %cst_28 [1] : vector<8x32xf32> to vector<8xf32>
    %61 = vector.shape_cast %60 : vector<8xf32> to vector<8x1xf32>
    %62 = arith.mulf %61, %14 : vector<8x1xf32>
    %cst_29 = arith.constant 1.000000e-16 : f32
    %63 = vector.broadcast %cst_29 : f32 to vector<8x1xf32>
    %64 = arith.maximumf %62, %63 : vector<8x1xf32>
    %65 = math.rsqrt %64 : vector<8x1xf32>
    %66 = arith.mulf %58, %65 : vector<8x1xf32>
    %67 = arith.addf %54, %66 : vector<8x1xf32>
    %c0_30 = arith.constant 0 : index
    %c0_31 = arith.constant 0 : index
    %68 = vector.load %arg7[%c0_30, %c0_31] : memref<1x1xf32, #tpu.memory_space<vmem>>, vector<1x1xf32>
    %69 = vector.shape_cast %67 : vector<8x1xf32> to vector<1x8x1xf32>
    %cst_32 = arith.constant dense<0.000000e+00> : vector<1xf32>
    %70 = vector.multi_reduction <add>, %69, %cst_32 [1, 2] : vector<1x8x1xf32> to vector<1xf32>
    %71 = vector.shape_cast %70 : vector<1xf32> to vector<1x1x1xf32>
    %72 = vector.extract %71[0, 0, 0] : f32 from vector<1x1x1xf32>
    %73 = vector.broadcast %72 : f32 to vector<1x1xf32>
    %74 = arith.addf %68, %73 : vector<1x1xf32>
    %c0_33 = arith.constant 0 : index
    %c0_34 = arith.constant 0 : index
    %75 = vector.load %arg7[%c0_33, %c0_34] : memref<1x1xf32, #tpu.memory_space<vmem>>, vector<1x1xf32>
    tpu.vector_store %arg7[%c0_33, %c0_34], %74 {strides = array<i32>} : memref<1x1xf32, #tpu.memory_space<vmem>>, vector<1x1xf32>,
    %c0_i32_35 = arith.constant 0 : i32
    %76 = arith.cmpi eq, %arg1, %c0_i32_35 : i32
    %77 = arith.extui %76 : i1 to i32
    %c0_i32_36 = arith.constant 0 : i32
    %78 = arith.cmpi ne, %77, %c0_i32_36 : i32
    scf.if %78 {
      %c0_37 = arith.constant 0 : index
      %c0_38 = arith.constant 0 : index
      %79 = vector.load %arg7[%c0_37, %c0_38] : memref<1x1xf32, #tpu.memory_space<vmem>>, vector<1x1xf32>
      %cst_39 = arith.constant 3.125000e-02 : f32
      %80 = vector.broadcast %cst_39 : f32 to vector<1x1xf32>
      %81 = arith.mulf %79, %80 : vector<1x1xf32>
      %82 = vector.shape_cast %81 : vector<1x1xf32> to vector<1x1x1xf32>
      %83 = vector.shape_cast %82 : vector<1x1x1xf32> to vector<1x1x1xf32>
      %84 = vector.broadcast %83 : vector<1x1x1xf32> to vector<1x8x128xf32>
      %c0_40 = arith.constant 0 : index
      %c0_41 = arith.constant 0 : index
      %c0_42 = arith.constant 0 : index
      %85 = vector.load %arg6[%c0_40, %c0_41, %c0_42] : memref<1x8x128xf32, #tpu.memory_space<vmem>>, vector<1x8x128xf32>
      tpu.vector_store %arg6[%c0_40, %c0_41, %c0_42], %84 {strides = array<i32>} : memref<1x8x128xf32, #tpu.memory_space<vmem>>, vector<1x8x128xf32>,
    } else {
    }
    return
  }
  func.func @transform_0(%arg0: i32, %arg1: i32) -> (i32, i32) {
    %c1_i32 = arith.constant 1 : i32
    %0 = arith.muli %arg0, %c1_i32 : i32
    %1 = arith.addi %0, %arg1 : i32
    %c0_i32 = arith.constant 0 : i32
    %c0_i32_0 = arith.constant 0 : i32
    return %1, %c0_i32 : i32, i32
  }
  func.func @transform_1(%arg0: i32, %arg1: i32) -> (i32, i32) {
    %c1_i32 = arith.constant 1 : i32
    %0 = arith.muli %arg0, %c1_i32 : i32
    %1 = arith.addi %0, %arg1 : i32
    %c0_i32 = arith.constant 0 : i32
    %c0_i32_0 = arith.constant 0 : i32
    return %1, %c0_i32 : i32, i32
  }
  func.func @transform_2(%arg0: i32, %arg1: i32) -> (i32, i32) {
    %c1_i32 = arith.constant 1 : i32
    %0 = arith.muli %arg0, %c1_i32 : i32
    %1 = arith.addi %0, %arg1 : i32
    %c0_i32 = arith.constant 0 : i32
    %c0_i32_0 = arith.constant 0 : i32
    return %1, %c0_i32 : i32, i32
  }
  func.func @transform_3(%arg0: i32, %arg1: i32) -> (i32, i32) {
    %c1_i32 = arith.constant 1 : i32
    %0 = arith.muli %arg0, %c1_i32 : i32
    %1 = arith.addi %0, %arg1 : i32
    %c0_i32 = arith.constant 0 : i32
    %c0_i32_0 = arith.constant 0 : i32
    return %1, %c0_i32 : i32, i32
  }
  func.func @transform_4(%arg0: i32, %arg1: i32) -> (i32, i32, i32) {
    %c0_i32 = arith.constant 0 : i32
    %c0_i32_0 = arith.constant 0 : i32
    %c0_i32_1 = arith.constant 0 : i32
    return %arg0, %c0_i32, %c0_i32_0 : i32, i32, i32
  }
}

</mosaic_0001>

<bundles_post_ra>
// kernel: tpu_custom_call.1
= control target key start
LH: loop header
LB: loop body
LE: loop exit
PB: predicated region body
PF: predicated region fallthrough
CT: control target
= control target key end

     0   :  { %9 = vsyncpa [#allocation4], 0  ;;  %s448_s0 = inlined_call_operand.hbm [shape: f32[8,32], index: 0, kind: input, shape index: {}]   ;;  %s449_s1 = inlined_call_operand.hbm [shape: f32[8,32], index: 1, kind: input, shape index: {}]   ;;  %s450_s2 = inlined_call_operand.hbm [shape: f32[8,32], index: 2, kind: input, shape index: {}]   ;;  %s451_s3 = inlined_call_operand.hbm [shape: f32[8,32], index: 3, kind: input, shape index: {}]   ;;  %s452_s4 = inlined_call_operand.hbm [shape: f32[1,8,128], index: 4, kind: output, shape index: {}]  }
   0x1   :  { %10 = vsyncpa [#allocation7], 0 }
   0x2   :  { %11 = vsyncpa [#allocation10], 0  ;;  %s35_s17 = sshll.u32 %s449_s1, 4  ;;  %s36_s17 = int_to_ptr.hbm [resolvable:$true] %s35_s17 }
   0x3   :  { %12 = vsyncpa [#allocation5], 0  ;;  %s390_s18 = smov [#allocation6]   ;;  %s21_s22 = sshll.u32 %s448_s0, 4  ;;  %s22_s22 = int_to_ptr.hbm [resolvable:$true] %s21_s22 }
   0x4   :  { %s37_s19 = sshll.u32 %s390_s18, 4  ;;  %s391_s23 = smov [#allocation3]   ;;  %s38_s19 = int_to_ptr.vmem [resolvable:$true] %s37_s19 }
   0x5   :  { %40 = dma.hbm_to_vmem [thread:$0]  %s36_s17, 128, %s38_s19, [#allocation7]  }
   0x6   :  { %s23_s24 = sshll.u32 %s391_s23, 4  ;;  %s49_s27 = sshll.u32 %s450_s2, 4  ;;  %s24_s24 = int_to_ptr.vmem [resolvable:$true] %s23_s24  ;;  %s50_s27 = int_to_ptr.hbm [resolvable:$true] %s49_s27 }
   0x7   :  { %26 = dma.hbm_to_vmem [thread:$0]  %s22_s22, 128, %s24_s24, [#allocation4]  }
   0x8   :  { %s63_s29 = sshll.u32 %s451_s3, 4  ;;  %s392_s30 = smov [#allocation8]   ;;  %s64_s29 = int_to_ptr.hbm [resolvable:$true] %s63_s29 }
   0x9   :  { %s51_s5 = sshll.u32 %s392_s30, 4  ;;  %s393_s0 = smov [#allocation9]   ;;  %s52_s5 = int_to_ptr.vmem [resolvable:$true] %s51_s5 }
   0xa   :  { %54 = dma.hbm_to_vmem [thread:$0]  %s50_s27, 128, %s52_s5, [#allocation7]  }
   0xb   :  { %s65_s6 = sshll.u32 %s393_s0, 4  ;;  %s66_s6 = int_to_ptr.vmem [resolvable:$true] %s65_s6 }
   0xc   :  { %68 = dma.hbm_to_vmem [thread:$0]  %s64_s29, 128, %s66_s6, [#allocation10]  }
   0xd   :  { %382 = dma.done.wait [#allocation4], 128  }
   0xe   :  { %383 = vsyncadd [#allocation4], 4294967168 }
   0xf   :  { %384 = dma.done.wait [#allocation7], 256  }
  0x10   :  { %385 = vsyncadd [#allocation7], 4294967040 }
  0x11   :  { %386 = dma.done.wait [#allocation10], 128  }
  0x12   :  { %387 = vsyncadd [#allocation10], 4294967168  ;;  %v96_v0 = vld [vmem:[#allocation6] sm:$0xff]  ;;  %vm104_vm0 = vcmask 261120   ;;  %v95_v1 = vld [vmem:[#allocation3] sm:$0xff]  ;;  %vm197_vm13 = vcmask 7168  }
  0x13   :  { %v100_v2 = vld [vmem:[#allocation9] sm:$0xff]  ;;  %v134_v3 = vmul.f32 %v96_v0, %v96_v0  ;;  %v97_v4 = vadd.f32 %v96_v0, %v95_v1  ;;  %v98_v6 = vld [vmem:[#allocation8] sm:$0xff]  ;;  %v112_v18 = vmul.f32 %v95_v1, %v95_v1  ;;  %vm93_vm14 = vcmask 0   ;;  %s396_s3 = smov [#allocation11]   ;;  %s231_s10 = sshll.u32 %s452_s4, 4  ;;  %s232_s10 = int_to_ptr.hbm [resolvable:$true] %s231_s10 }
  0x14   :  { %v178_v5 = vmul.f32 %v100_v2, %v100_v2  ;;  %v156_v10 = vmul.f32 %v98_v6, %v98_v6  ;;  %s229_s7 = sshll.u32 %s396_s3, 4  ;;  %s230_s7 = int_to_ptr.vmem [resolvable:$true] %s229_s7 }
  0x15   :  { %v135_v7 = vsel %vm104_vm0, %v134_v3, 0.0  ;;  %v99_v9 = vadd.f32 %v98_v6, %v97_v4  ;;  %v113_v21 = vsel %vm104_vm0, %v112_v18, 0.0 }
  0x16   :  { %v179_v8 = vsel %vm104_vm0, %v178_v5, 0.0  ;;  %136 = vadd.xlane.f32.xlu1 %v135_v7  ;;  %v157_v13 = vsel %vm104_vm0, %v156_v10, 0.0 }
  0x17   :  { %180 = vadd.xlane.f32.xlu2 %v179_v8  ;;  %v101_v11 = vadd.f32 %v100_v2, %v99_v9 }
  0x19   :  { %v102_v12 = vmul.f32 0.25, %v101_v11 }
  0x1b   :  { %v103_v14 = vmul.f32 %v102_v12, %v102_v12  ;;  %v108_v15 = vmul.f32 %v102_v12, %v95_v1  ;;  %v152_v19 = vmul.f32 %v102_v12, %v98_v6  ;;  %v174_v20 = vmul.f32 %v102_v12, %v100_v2 }
  0x1c   :  { %v130_v24 = vmul.f32 %v102_v12, %v96_v0 }
  0x1d   :  { %v105_v16 = vsel %vm104_vm0, %v103_v14, 0.0  ;;  %v109_v17 = vsel %vm104_vm0, %v108_v15, 0.0  ;;  %v153_v22 = vsel %vm104_vm0, %v152_v19, 0.0  ;;  %v175_v23 = vsel %vm104_vm0, %v174_v20, 0.0 }
  0x1e   :  { %158 = vadd.xlane.f32.xlu1 %v157_v13  ;;  %106 = vadd.xlane.f32.xlu0 %v105_v16  ;;  %v131_v25 = vsel %vm104_vm0, %v130_v24, 0.0  ;;  %v394_v15 = vmov 0.0  }
  0x1f   :  { %110 = vadd.xlane.f32.xlu2 %v109_v17  ;;  %94 = vst.msk [vmem:[#allocation2] sm:$0x1] %vm93_vm14, %v394_v15 }
  0x26   :  { %114 = vadd.xlane.f32.xlu0 %v113_v21  ;;  %154 = vadd.xlane.f32.xlu1 %v153_v22  ;;  %v196_v24 = vld [vmem:[#allocation2] sm:$0x1] }
  0x27   :  { %176 = vadd.xlane.f32.xlu2 %v175_v23  ;;  %v395_v23 = vmov 0  }
  0x28   :  { %252 = vset.pattern.permute.xlu1 %v395_v23  ;;  %253 = vset.pattern.permute.xlu0 %v395_v23 }
  0x2e   :  { %132 = vadd.xlane.f32.xlu0 %v131_v25 }
  0x89   :  { %v137_v26 = vpop.xlane.xlu1 %136 }
  0x8a   :  { %v181_v27 = vpop.xlane.xlu2 %180 }
  0x91   :  { %v159_v28 = vpop.xlane.xlu1 %158  ;;  %v107_v29 = vpop.xlane.xlu0 %106 }
  0x92   :  { %v138_v30 = vmul.f32 %v137_v26, %v107_v29  ;;  %v160_v31 = vmul.f32 %v159_v28, %v107_v29  ;;  %v182_v32 = vmul.f32 %v181_v27, %v107_v29  ;;  %v111_v55 = vpop.xlane.xlu2 %110 }
  0x94   :  { %v139_v33 = vmax.f32 %v138_v30, 1e-16  ;;  %v161_v34 = vmax.f32 %v160_v31, 1e-16  ;;  %v183_v35 = vmax.f32 %v182_v32, 1e-16 }
  0x96   :  { %254 = vrsqrt.f32 %v139_v33  ;;  %vm146_vm4 = vweird.f32 %v139_v33  ;;  %vm168_vm6 = vweird.f32 %v161_v34  ;;  %vm190_vm11 = vweird.f32 %v183_v35 }
  0x97   :  { %256 = vrsqrt.f32 %v161_v34 }
  0x98   :  { %258 = vrsqrt.f32 %v183_v35 }
  0x99   :  { %v115_v36 = vpop.xlane.xlu0 %114  ;;  %v155_v3 = vpop.xlane.xlu1 %154 }
  0x9a   :  { %v116_v37 = vmul.f32 %v115_v36, %v107_v29  ;;  %v177_v7 = vpop.xlane.xlu2 %176 }
  0x9c   :  { %v255_v38 = vpop.eup %254  ;;  %v117_v39 = vmax.f32 %v116_v37, 1e-16 }
  0x9d   :  { %v257_v40 = vpop.eup %256  ;;  %v141_v41 = vmul.f32 %v255_v38, %v139_v33  ;;  %vm147_vm1 = vweird.f32 %v255_v38 }
  0x9e   :  { %v259_v42 = vpop.eup %258  ;;  %v163_v43 = vmul.f32 %v257_v40, %v161_v34  ;;  %260 = vrsqrt.f32 %v117_v39  ;;  %vm169_vm2 = vweird.f32 %v257_v40  ;;  %vm124_vm5 = vweird.f32 %v117_v39  ;;  %vm148_vm7 = vmor %vm146_vm4, %vm147_vm1 }
  0x9f   :  { %v185_v44 = vmul.f32 %v259_v42, %v183_v35  ;;  %v142_v45 = vmul.f32 %v255_v38, %v141_v41  ;;  %vm170_vm8 = vmor %vm168_vm6, %vm169_vm2  ;;  %vm191_vm9 = vweird.f32 %v259_v42 }
  0xa0   :  { %v164_v46 = vmul.f32 %v257_v40, %v163_v43  ;;  %vm192_vm12 = vmor %vm190_vm11, %vm191_vm9 }
  0xa1   :  { %v186_v47 = vmul.f32 %v259_v42, %v185_v44  ;;  %v143_v48 = vmul.f32 0.5, %v142_v45  ;;  %v133_v1 = vpop.xlane.xlu0 %132 }
  0xa2   :  { %v165_v49 = vmul.f32 0.5, %v164_v46 }
  0xa3   :  { %v187_v52 = vmul.f32 0.5, %v186_v47  ;;  %v144_v53 = vsub.f32 1.5, %v143_v48 }
  0xa4   :  { %v261_v50 = vpop.eup %260  ;;  %v166_v56 = vsub.f32 1.5, %v165_v49 }
  0xa5   :  { %v119_v51 = vmul.f32 %v261_v50, %v117_v39  ;;  %v188_v58 = vsub.f32 1.5, %v187_v52  ;;  %v145_v59 = vmul.f32 %v255_v38, %v144_v53  ;;  %vm125_vm3 = vweird.f32 %v261_v50 }
  0xa6   :  { %v167_v61 = vmul.f32 %v257_v40, %v166_v56  ;;  %vm126_vm10 = vmor %vm124_vm5, %vm125_vm3 }
  0xa7   :  { %v120_v54 = vmul.f32 %v261_v50, %v119_v51  ;;  %v189_v63 = vmul.f32 %v259_v42, %v188_v58  ;;  %v149_v0 = vsel %vm148_vm7, %v255_v38, %v145_v59 }
  0xa8   :  { %v171_v4 = vsel %vm170_vm8, %v257_v40, %v167_v61  ;;  %v150_v6 = vmul.f32 %v149_v0, %v133_v1 }
  0xa9   :  { %v121_v57 = vmul.f32 0.5, %v120_v54  ;;  %v193_v8 = vsel %vm192_vm12, %v259_v42, %v189_v63  ;;  %v172_v9 = vmul.f32 %v171_v4, %v155_v3 }
  0xaa   :  { %v194_v11 = vmul.f32 %v193_v8, %v177_v7 }
  0xab   :  { %v122_v60 = vsub.f32 1.5, %v121_v57 }
  0xad   :  { %v123_v62 = vmul.f32 %v261_v50, %v122_v60 }
  0xaf   :  { %v127_v2 = vsel %vm126_vm10, %v261_v50, %v123_v62 }
  0xb0   :  { %v128_v5 = vmul.f32 %v127_v2, %v111_v55 }
  0xb2   :  { %v151_v10 = vadd.f32 %v150_v6, %v128_v5 }
  0xb4   :  { %v173_v12 = vadd.f32 %v172_v9, %v151_v10 }
  0xb6   :  { %v195_v13 = vadd.f32 %v194_v11, %v173_v12 }
  0xb8   :  { %v198_v14 = vsel %vm197_vm13, %v195_v13, 0.0 }
  0xb9   :  { %199 = vadd.xlane.f32.xlu0 %v198_v14 }
 0x12c   :  { %v200_v16 = vpop.xlane.xlu0 %199 }
 0x12d   :  { %v201_v17 = vrot.slane %v200_v16, 4 }
 0x12f   :  { %v202_v18 = vadd.f32 %v201_v17, %v200_v16 }
 0x131   :  { %v203_v19 = vrot.slane %v202_v18, 2 }
 0x133   :  { %v204_v20 = vadd.f32 %v203_v19, %v202_v18 }
 0x135   :  { %v205_v21 = vrot.slane %v204_v20, 1 }
 0x137   :  { %v206_v22 = vadd.f32 %v205_v21, %v204_v20 }
 0x139   :  { %243 = vpush %v206_v22 }
 0x16a   :  { %s244_s2 = spop %243 }
 0x16b   :  { %v208_v25 = vstv %s244_s2 }
 0x16c   :  { %v209_v26 = vadd.f32 %v208_v25, %v196_v24 }
 0x16e   :  { %211 = vst.msk [vmem:[#allocation2] sm:$0x1] %vm93_vm14, %v209_v26 }
 0x175   :  { %v215_v27 = vld [vmem:[#allocation2] sm:$0x1] }
 0x176   :  { %v216_v28 = vmul.f32 0.03125, %v215_v27 }
 0x178   :  { %v218_v29 = vperm.slane %v216_v28, 0 }
 0x17a   :  { %220 = vperm.xlu1 %252, %v218_v29  }
 0x1ec   :  { %v221_v30 = vpop.permute.xlu1 %220 }
 0x1ed   :  { %223 = vst [vmem:[#allocation11] sm:$0xff] %v221_v30 }
 0x1ee   :  { %234 = dma.vmem_to_hbm [thread:$0]  %s230_s7, 128, %s232_s10, [#allocation5]  }
 0x1ef   :  { %388 = dma.done.wait [#allocation5], 128  }
 0x1f0   :  { %389 = vsyncadd [#allocation5], 4294967168 }
 0x1f1   :  { %239 = vsyncpa [#allocation4], 1 }
 0x1f2   :  { %240 = vsyncpa [#allocation7], 1 }
 0x1f3   :  { %241 = vsyncpa [#allocation10], 1 }
 0x1f4   :  { %242 = vsyncpa [#allocation5], 1 }

</bundles_post_ra>
